<compile_context>
chip_gen: v5e
topology: v5e:2x2
jax: 0.10.0
libtpu: 0.0.40
codegen_flags: <defaults>
</compile_context>

<pallas_src>
import jax
import jax.numpy as jnp
from jax.experimental import pallas as pl
from jax.experimental.pallas import tpu as pltpu

# LayerNormalization parameters (nn.Parameter(torch.ones(1)/zeros(1)))
LN_ALPHA = 1.0
LN_BIAS = 0.0
LN_EPS = 1e-6


def _body(x_ref, w_ref, b_ref, o_ref, mask):
    # ---- LayerNorm over last dim (torch: unbiased std, /(std + eps)) ----
    x = x_ref[...].astype(jnp.float32)                       # (TR, H)
    h = x.shape[-1]
    mean = jnp.mean(x, axis=-1, keepdims=True)
    xc = x - mean
    var = jnp.sum(xc * xc, axis=-1, keepdims=True) * (1.0 / (h - 1))
    std = jnp.sqrt(var)
    normed = LN_ALPHA * xc / (std + LN_EPS) + LN_BIAS

    # ---- sublayer: fused linear projection, bf16 operands, f32 accumulate ----
    y = jnp.dot(normed.astype(jnp.bfloat16), w_ref[...],
                preferred_element_type=jnp.float32)
    y = y + b_ref[...].astype(jnp.float32)                   # (1, H) broadcast

    # ---- dropout (inverted; mask is pre-scaled by 1/(1-p)) ----
    if mask is not None:
        y = y * mask.astype(jnp.float32)

    # ---- residual add ----
    o_ref[...] = (x + y).astype(o_ref.dtype)


def _kernel_dropout(x_ref, w_ref, b_ref, mask_ref, o_ref):
    _body(x_ref, w_ref, b_ref, o_ref, mask=mask_ref[...])


def _kernel_nodrop(x_ref, w_ref, b_ref, o_ref):
    _body(x_ref, w_ref, b_ref, o_ref, mask=None)


def _round_up(a, m):
    return (a + m - 1) // m * m


def residual_connection(x, w, b, key, *, dropout_p=0.1, tile_rows=512):
    """x: (B, S, H). w: (H, H). b: (H,). key: PRNGKey for dropout.

    Returns x + dropout(LayerNorm(x) @ w + b), shape (B, S, H).
    """
    B, S, H = x.shape
    rows = B * S

    if dropout_p >= 1.0:
        return x  # everything dropped -> residual passes through unchanged
    assert 0.0 <= dropout_p < 1.0

    x2 = x.reshape(rows, H)
    b2 = b.reshape(1, H).astype(jnp.float32)
    w_bf16 = w.astype(jnp.bfloat16)  # resident bf16 weight: half VMEM, MXU-native

    # Large row tiles, shrunk for tiny inputs; pad rows to a tile multiple.
    tile_rows = max(8, min(tile_rows, _round_up(rows, 8)))
    padded_rows = _round_up(rows, tile_rows)
    if padded_rows != rows:
        x2 = jnp.pad(x2, ((0, padded_rows - rows), (0, 0)))

    grid = (padded_rows // tile_rows,)
    in_specs = [
        pl.BlockSpec((tile_rows, H), lambda i: (i, 0)),   # x tile
        pl.BlockSpec((H, H), lambda i: (0, 0)),           # sublayer W (resident)
        pl.BlockSpec((1, H), lambda i: (0, 0)),           # sublayer b (resident)
    ]
    args = [x2, w_bf16, b2]

    if dropout_p > 0.0:
        keep = jax.random.bernoulli(key, 1.0 - dropout_p, (padded_rows, H))
        scale = jnp.asarray(1.0 / (1.0 - dropout_p), dtype=x.dtype)
        mask = keep.astype(x.dtype) * scale               # 0 or 1/(1-p)
        in_specs.append(pl.BlockSpec((tile_rows, H), lambda i: (i, 0)))
        args.append(mask)
        kernel = _kernel_dropout
    else:
        kernel = _kernel_nodrop

    out = pl.pallas_call(
        kernel,
        out_shape=jax.ShapeDtypeStruct((padded_rows, H), x.dtype),
        grid=grid,
        in_specs=in_specs,
        out_specs=pl.BlockSpec((tile_rows, H), lambda i: (i, 0)),
        compiler_params=pltpu.CompilerParams(
            # Rows are independent -> shard across both TCs on v7x; neutral on
            # v5e/v6e (single TensorCore).
            dimension_semantics=("parallel",),
        ),
    )(*args)

    return out[:rows].reshape(B, S, H)


if __name__ == "__main__":
    B, S, H = 2, 8, 128  # batch, seq, d_model
    key = jax.random.PRNGKey(0)
    kx, kw, kb, kd = jax.random.split(key, 4)

    x = jax.random.normal(kx, (B, S, H), dtype=jnp.float32)
    # Deterministic "sublayer" (Linear d_model -> d_model) parameters.
    w = jax.random.normal(kw, (H, H), dtype=jnp.float32) * (1.0 / jnp.sqrt(H))
    b = jax.random.normal(kb, (H,), dtype=jnp.float32) * 0.01

    out = residual_connection(x, w, b, kd, dropout_p=0.1)
    jax.block_until_ready(out)

    assert out.shape == (B, S, H)
    assert jnp.all(jnp.isfinite(out))
    print("KERNEL_OK")
</pallas_src>

<mosaic_0001>
module attributes {stable_mosaic.version = 11 : i64} {
  func.func @_kernel_dropout(%arg0: i32, %arg1: memref<16x128xf32, #tpu.memory_space<vmem>>, %arg2: memref<128x128xbf16, #tpu.memory_space<vmem>>, %arg3: memref<1x128xf32, #tpu.memory_space<vmem>>, %arg4: memref<16x128xf32, #tpu.memory_space<vmem>>, %arg5: memref<16x128xf32, #tpu.memory_space<vmem>>) attributes {dimension_semantics = [#tpu.dimension_semantics<parallel>], iteration_bounds = array<i64: 1>, scalar_prefetch = 0 : i64, scratch_operands = 0 : i64, tpu.core_type = #tpu.core_type<tc>, window_params = [{transform_indices = @transform_0, window_bounds = array<i64: 16, 128>}, {pipeline_mode = #tpu.pipeline_mode<synchronous>, transform_indices = @transform_1, window_bounds = array<i64: 128, 128>}, {pipeline_mode = #tpu.pipeline_mode<synchronous>, transform_indices = @transform_2, window_bounds = array<i64: 1, 128>}, {transform_indices = @transform_3, window_bounds = array<i64: 16, 128>}, {transform_indices = @transform_4, window_bounds = array<i64: 16, 128>}]} {
    %c0 = arith.constant 0 : index
    %c0_0 = arith.constant 0 : index
    %0 = vector.load %arg4[%c0, %c0_0] : memref<16x128xf32, #tpu.memory_space<vmem>>, vector<16x128xf32>
    %c0_1 = arith.constant 0 : index
    %c0_2 = arith.constant 0 : index
    %1 = vector.load %arg1[%c0_1, %c0_2] : memref<16x128xf32, #tpu.memory_space<vmem>>, vector<16x128xf32>
    %cst = arith.constant dense<0.000000e+00> : vector<16xf32>
    %2 = vector.multi_reduction <add>, %1, %cst [1] : vector<16x128xf32> to vector<16xf32>
    %3 = vector.shape_cast %2 : vector<16xf32> to vector<16x1xf32>
    %cst_3 = arith.constant 1.280000e+02 : f32
    %4 = vector.broadcast %cst_3 : f32 to vector<16x1xf32>
    %5 = arith.divf %3, %4 : vector<16x1xf32>
    %6 = vector.broadcast %5 : vector<16x1xf32> to vector<16x128xf32>
    %7 = arith.subf %1, %6 : vector<16x128xf32>
    %8 = arith.mulf %7, %7 : vector<16x128xf32>
    %cst_4 = arith.constant dense<0.000000e+00> : vector<16xf32>
    %9 = vector.multi_reduction <add>, %8, %cst_4 [1] : vector<16x128xf32> to vector<16xf32>
    %10 = vector.shape_cast %9 : vector<16xf32> to vector<16x1xf32>
    %cst_5 = arith.constant 0.00787401571 : f32
    %11 = vector.broadcast %cst_5 : f32 to vector<16x1xf32>
    %12 = arith.mulf %10, %11 : vector<16x1xf32>
    %13 = math.sqrt %12 : vector<16x1xf32>
    %cst_6 = arith.constant 1.000000e+00 : f32
    %14 = vector.broadcast %cst_6 : f32 to vector<16x128xf32>
    %15 = arith.mulf %14, %7 : vector<16x128xf32>
    %cst_7 = arith.constant 9.99999997E-7 : f32
    %16 = vector.broadcast %cst_7 : f32 to vector<16x1xf32>
    %17 = arith.addf %13, %16 : vector<16x1xf32>
    %18 = vector.broadcast %17 : vector<16x1xf32> to vector<16x128xf32>
    %19 = arith.divf %15, %18 : vector<16x128xf32>
    %cst_8 = arith.constant 0.000000e+00 : f32
    %20 = vector.broadcast %cst_8 : f32 to vector<16x128xf32>
    %21 = arith.addf %19, %20 : vector<16x128xf32>
    %22 = arith.truncf %21 : vector<16x128xf32> to vector<16x128xbf16>
    %c0_9 = arith.constant 0 : index
    %c0_10 = arith.constant 0 : index
    %23 = vector.load %arg2[%c0_9, %c0_10] : memref<128x128xbf16, #tpu.memory_space<vmem>>, vector<128x128xbf16>
    %cst_11 = arith.constant dense<0.000000e+00> : vector<16x128xf32>
    %24 = tpu.matmul %22, %23, %cst_11 {dimension_numbers = #tpu.dot_dimension_numbers<[1], [0], [0], [1], [0, 0, 1, 1], [], []>} : vector<16x128xbf16>, vector<128x128xbf16>, vector<16x128xf32> -> vector<16x128xf32>
    %c0_12 = arith.constant 0 : index
    %c0_13 = arith.constant 0 : index
    %25 = vector.load %arg3[%c0_12, %c0_13] : memref<1x128xf32, #tpu.memory_space<vmem>>, vector<1x128xf32>
    %26 = vector.broadcast %25 : vector<1x128xf32> to vector<16x128xf32>
    %27 = arith.addf %24, %26 : vector<16x128xf32>
    %28 = arith.mulf %27, %0 : vector<16x128xf32>
    %29 = arith.addf %1, %28 : vector<16x128xf32>
    %c0_14 = arith.constant 0 : index
    %c0_15 = arith.constant 0 : index
    %30 = vector.load %arg5[%c0_14, %c0_15] : memref<16x128xf32, #tpu.memory_space<vmem>>, vector<16x128xf32>
    tpu.vector_store %arg5[%c0_14, %c0_15], %29 {strides = array<i32>} : memref<16x128xf32, #tpu.memory_space<vmem>>, vector<16x128xf32>,
    return
  }
  func.func @transform_0(%arg0: i32) -> (i32, i32) {
    %c0_i32 = arith.constant 0 : i32
    %c0_i32_0 = arith.constant 0 : i32
    return %arg0, %c0_i32 : i32, i32
  }
  func.func @transform_1(%arg0: i32) -> (i32, i32) {
    %c0_i32 = arith.constant 0 : i32
    %c0_i32_0 = arith.constant 0 : i32
    %c0_i32_1 = arith.constant 0 : i32
    return %c0_i32, %c0_i32_0 : i32, i32
  }
  func.func @transform_2(%arg0: i32) -> (i32, i32) {
    %c0_i32 = arith.constant 0 : i32
    %c0_i32_0 = arith.constant 0 : i32
    %c0_i32_1 = arith.constant 0 : i32
    return %c0_i32, %c0_i32_0 : i32, i32
  }
  func.func @transform_3(%arg0: i32) -> (i32, i32) {
    %c0_i32 = arith.constant 0 : i32
    %c0_i32_0 = arith.constant 0 : i32
    return %arg0, %c0_i32 : i32, i32
  }
  func.func @transform_4(%arg0: i32) -> (i32, i32) {
    %c0_i32 = arith.constant 0 : i32
    %c0_i32_0 = arith.constant 0 : i32
    return %arg0, %c0_i32 : i32, i32
  }
}

</mosaic_0001>

<bundles_post_ra>
// kernel: tpu_custom_call.1
= control target key start
LH: loop header
LB: loop body
LE: loop exit
PB: predicated region body
PF: predicated region fallthrough
CT: control target
= control target key end

     0   :  { %9 = vsyncpa [#allocation3], 0  ;;  %s499_s0 = inlined_call_operand.hbm [shape: f32[16,128], index: 0, kind: input, shape index: {}]   ;;  %s500_s1 = inlined_call_operand.hbm [shape: bf16[128,128], index: 1, kind: input, shape index: {}]   ;;  %s501_s2 = inlined_call_operand.vmem [shape: f32[1,128], index: 2, kind: input, shape index: {}]   ;;  %s502_s3 = inlined_call_operand.hbm [shape: f32[16,128], index: 3, kind: input, shape index: {}]   ;;  %s503_s4 = inlined_call_operand.hbm [shape: f32[16,128], index: 4, kind: output, shape index: {}]  }
   0x1   :  { %10 = vsyncpa [#allocation6], 0  ;;  %s29_s17 = sshll.u32 %s500_s1, 4  ;;  %s30_s17 = int_to_ptr.hbm [resolvable:$true] %s29_s17 }
   0x2   :  { %11 = vsyncpa [#allocation4], 0  ;;  %s421_s18 = smov [#allocation5]   ;;  %s16_s22 = sshll.u32 %s499_s0, 4  ;;  %s17_s22 = int_to_ptr.hbm [resolvable:$true] %s16_s22 }
   0x3   :  { %s31_s19 = sshll.u32 %s421_s18, 4  ;;  %s422_s23 = smov 64   ;;  %s32_s19 = int_to_ptr.vmem [resolvable:$true] %s31_s19 }
   0x4   :  { %s423_s24 = smov 4   ;;  %s424_s25 = smov [#allocation2]  }
   0x5   :  { %37 = dma.hbm_to_vmem [thread:$0]  %s30_s17, 1024, %s32_s19, [#allocation6], %s422_s23, %s422_s23, %s423_s24  }
   0x6   :  { %s18_s26 = sshll.u32 %s424_s25, 4  ;;  %s425_s27 = smov 128   ;;  %s19_s26 = int_to_ptr.vmem [resolvable:$true] %s18_s26 }
   0x7   :  { %s426_s28 = smov 8   ;;  %s44_s30 = sshll.u32 %s502_s3, 4  ;;  %s45_s30 = int_to_ptr.hbm [resolvable:$true] %s44_s30 }
   0x8   :  { %24 = dma.hbm_to_vmem [thread:$0]  %s17_s22, 256, %s19_s26, [#allocation3], %s425_s27, %s425_s27, %s426_s28  }
   0x9   :  { %s427_s5 = smov [#allocation7]  }
   0xa   :  { %s46_s0 = sshll.u32 %s427_s5, 4  ;;  %s47_s0 = int_to_ptr.vmem [resolvable:$true] %s46_s0 }
   0xb   :  { %52 = dma.hbm_to_vmem [thread:$0]  %s45_s30, 256, %s47_s0, [#allocation6], %s425_s27, %s425_s27, %s426_s28  }
   0xc   :  { %415 = dma.done.wait [#allocation3], 256  }
   0xd   :  { %416 = vsyncadd [#allocation3], 4294967040 }
   0xe   :  { %417 = dma.done.wait [#allocation6], 1280  }
   0xf   :  { %418 = vsyncadd [#allocation6], 4294966016  ;;  %v470_v0 = vld [vmem:[#allocation2] sm:$0xff]  ;;  %v473_v1 = vld [vmem:[#allocation2 + $0x8] sm:$0xff]  ;;  %v428_v2 = vmov 128.0   ;;  %s429_s7 = smov [#allocation8]  }
  0x10   :  { %69 = vadd.xlane.f32.xlu0 %v470_v0  ;;  %309 = vrcp.f32 %v428_v2  ;;  %v298_v17 = vld [vmem:[#allocation5 + $0x38] sm:$0xff]  ;;  %v297_v18 = vld [vmem:[#allocation5 + $0x30] sm:$0xff]  ;;  %v296_v19 = vld [vmem:[#allocation5 + $0x28] sm:$0xff]  ;;  %s243_s8 = sshll.u32 %s429_s7, 4  ;;  %s245_s11 = sshll.u32 %s503_s4, 4  ;;  %s244_s8 = int_to_ptr.vmem [resolvable:$true] %s243_s8  ;;  %s246_s11 = int_to_ptr.hbm [resolvable:$true] %s245_s11 }
  0x11   :  { %219 = vmatpush.bf16.msra.mxu0 %v298_v17  ;;  %v295_v21 = vld [vmem:[#allocation5 + $0x20] sm:$0xff]  ;;  %v294_v23 = vld [vmem:[#allocation5 + $0x18] sm:$0xff]  ;;  %v293_v25 = vld [vmem:[#allocation5 + $0x10] sm:$0xff] }
  0x12   :  { %v292_v30 = vld [vmem:[#allocation5 + $0x8] sm:$0xff]  ;;  %v291_v33 = vld [vmem:[#allocation5] sm:$0xff] }
  0x15   :  { %220 = vmatpush.bf16.msra.mxu0 %v297_v18 }
  0x16   :  { %v310_v3 = vpop.eup %309 }
  0x17   :  { %v74_v4 = vmul.f32 128.0, %v310_v3  ;;  %vm78_vm0 = vweird.f32 %v310_v3 }
  0x18   :  { %71 = vadd.xlane.f32.xlu0 %v473_v1 }
  0x19   :  { %v75_v5 = vsub.f32 1.0, %v74_v4  ;;  %221 = vmatpush.bf16.msra.mxu0 %v296_v19 }
  0x1b   :  { %v76_v6 = vmul.f32 %v310_v3, %v75_v5 }
  0x1d   :  { %v77_v7 = vadd.f32 %v310_v3, %v76_v6  ;;  %222 = vmatpush.bf16.msra.mxu0 %v295_v21 }
  0x1f   :  { %v79_v8 = vsel %vm78_vm0, %v310_v3, %v77_v7 }
  0x21   :  { %223 = vmatpush.bf16.msra.mxu0 %v294_v23 }
  0x25   :  { %224 = vmatpush.bf16.msra.mxu0 %v293_v25 }
  0x29   :  { %225 = vmatpush.bf16.msra.mxu0 %v292_v30 }
  0x2d   :  { %226 = vmatpush.bf16.msra.mxu0 %v291_v33 }
  0x83   :  { %v70_v9 = vpop.xlane.xlu0 %69 }
  0x84   :  { %v80_v10 = vmul.f32 %v79_v8, %v70_v9 }
  0x86   :  { %v477_v11 = vsub.f32 %v470_v0, %v80_v10 }
  0x88   :  { %v84_v12 = vmul.f32 %v477_v11, %v477_v11 }
  0x8a   :  { %86 = vadd.xlane.f32.xlu1 %v84_v12 }
  0x8b   :  { %v72_v13 = vpop.xlane.xlu0 %71 }
  0x8c   :  { %v81_v14 = vmul.f32 %v79_v8, %v72_v13  ;;  %v308_v13 = vld [vmem:[%s501_s2] ss:$0 sm:$0xff] }
  0x8e   :  { %v482_v15 = vsub.f32 %v473_v1, %v81_v14  ;;  %v65_v14 = vld [vmem:[#allocation7] sm:$0xff] }
  0x90   :  { %v85_v16 = vmul.f32 %v482_v15, %v482_v15 }
  0x92   :  { %88 = vadd.xlane.f32.xlu1 %v85_v16 }
  0xfd   :  { %v87_v20 = vpop.xlane.xlu1 %86 }
  0xfe   :  { %v90_v22 = vmul.f32 0.007874016, %v87_v20  ;;  %v66_v20 = vld [vmem:[#allocation7 + $0x8] sm:$0xff] }
 0x100   :  { %311 = vrsqrt.f32 %v90_v22  ;;  %vm99_vm1 = vcmp.eq.f32.partialorder %v90_v22, inf  ;;  %v102_v39 = vand.u32 2147483648, %v90_v22  ;;  %vm101_vm2 = vcmp.eq.f32.partialorder %v90_v22, 0.0 }
 0x105   :  { %v89_v24 = vpop.xlane.xlu1 %88 }
 0x106   :  { %v312_v26 = vpop.eup %311  ;;  %v91_v27 = vmul.f32 0.007874016, %v89_v24 }
 0x107   :  { %v93_v28 = vmul.f32 %v312_v26, %v90_v22 }
 0x108   :  { %313 = vrsqrt.f32 %v91_v27  ;;  %vm111_vm3 = vcmp.eq.f32.partialorder %v91_v27, inf  ;;  %v114_v47 = vand.u32 2147483648, %v91_v27  ;;  %vm113_vm4 = vcmp.eq.f32.partialorder %v91_v27, 0.0 }
 0x109   :  { %v94_v29 = vmul.f32 %v312_v26, %v93_v28 }
 0x10b   :  { %v95_v31 = vmul.f32 0.5, %v94_v29 }
 0x10d   :  { %v96_v32 = vsub.f32 1.5, %v95_v31 }
 0x10e   :  { %v314_v34 = vpop.eup %313 }
 0x10f   :  { %v97_v35 = vmul.f32 %v312_v26, %v96_v32  ;;  %v105_v36 = vmul.f32 %v314_v34, %v91_v27 }
 0x111   :  { %v98_v37 = vmul.f32 %v97_v35, %v90_v22  ;;  %v106_v38 = vmul.f32 %v314_v34, %v105_v36 }
 0x113   :  { %v107_v40 = vmul.f32 0.5, %v106_v38  ;;  %v100_v41 = vsel %vm99_vm1, %v90_v22, %v98_v37 }
 0x114   :  { %v103_v42 = vsel %vm101_vm2, %v102_v39, %v100_v41 }
 0x115   :  { %v108_v43 = vsub.f32 1.5, %v107_v40  ;;  %v116_v44 = vadd.f32 1e-06, %v103_v42 }
 0x117   :  { %v109_v45 = vmul.f32 %v314_v34, %v108_v43  ;;  %315 = vrcp.f32 %v116_v44  ;;  %v129_v58 = vand.u32 2147483648, %v116_v44  ;;  %vm123_vm6 = vweird.f32 %v116_v44 }
 0x118   :  { %v127_v59 = vand.u32 2147483647, %v116_v44 }
 0x119   :  { %v110_v46 = vmul.f32 %v109_v45, %v91_v27  ;;  %v130_v3 = vor.u32 1.1754944e-38, %v129_v58 }
 0x11a   :  { %vm128_vm9 = vcmp.eq.f32.partialorder %v127_v59, 8.507059e+37 }
 0x11b   :  { %v112_v48 = vsel %vm111_vm3, %v91_v27, %v110_v46 }
 0x11c   :  { %v115_v49 = vsel %vm113_vm4, %v114_v47, %v112_v48 }
 0x11d   :  { %v316_v50 = vpop.eup %315  ;;  %v117_v51 = vadd.f32 1e-06, %v115_v49 }
 0x11e   :  { %v119_v52 = vmul.f32 %v316_v50, %v116_v44  ;;  %vm124_vm5 = vweird.f32 %v316_v50 }
 0x11f   :  { %317 = vrcp.f32 %v117_v51  ;;  %vm125_vm7 = vmor %vm123_vm6, %vm124_vm5  ;;  %v144_v61 = vand.u32 2147483648, %v117_v51  ;;  %v142_v2 = vand.u32 2147483647, %v117_v51  ;;  %vm138_vm10 = vweird.f32 %v117_v51 }
 0x120   :  { %v120_v53 = vsub.f32 1.0, %v119_v52 }
 0x121   :  { %v145_v6 = vor.u32 1.1754944e-38, %v144_v61  ;;  %vm143_vm12 = vcmp.eq.f32.partialorder %v142_v2, 8.507059e+37 }
 0x122   :  { %v121_v54 = vmul.f32 %v316_v50, %v120_v53 }
 0x124   :  { %v122_v56 = vadd.f32 %v316_v50, %v121_v54 }
 0x125   :  { %v318_v55 = vpop.eup %317 }
 0x126   :  { %v134_v57 = vmul.f32 %v318_v55, %v117_v51  ;;  %v126_v62 = vsel %vm125_vm7, %v316_v50, %v122_v56  ;;  %vm139_vm8 = vweird.f32 %v318_v55 }
 0x127   :  { %v131_v5 = vsel %vm128_vm9, %v130_v3, %v126_v62  ;;  %vm140_vm11 = vmor %vm138_vm10, %vm139_vm8 }
 0x128   :  { %v135_v60 = vsub.f32 1.0, %v134_v57  ;;  %v132_v9 = vmul.f32 %v131_v5, %v477_v11 }
 0x12a   :  { %v136_v63 = vmul.f32 %v318_v55, %v135_v60 }
 0x12c   :  { %v137_v4 = vadd.f32 %v318_v55, %v136_v63 }
 0x12e   :  { %v141_v7 = vsel %vm140_vm11, %v318_v55, %v137_v4 }
 0x12f   :  { %v146_v8 = vsel %vm143_vm12, %v145_v6, %v141_v7 }
 0x130   :  { %v147_v10 = vmul.f32 %v146_v8, %v482_v15 }
 0x132   :  { %v150_v12 = vpack.c.bf16 %v147_v10, %v132_v9 }
 0x134   :  { %227 = vmatmul.bf16.vlgmr.msra.gmra.mxu0 %v150_v12 }
 0x1b1   :  { %v228_v16 = vpop.f32.mrf.mxu0 }
 0x1b2   :  { %v229_v17 = vadd.f32 %v308_v13, %v228_v16 }
 0x1b4   :  { %v233_v18 = vmul.f32 %v229_v17, %v65_v14 }
 0x1b6   :  { %v235_v19 = vadd.f32 %v233_v18, %v470_v0 }
 0x1b8   :  { %237 = vst [vmem:[#allocation8] sm:$0xff] %v235_v19 }
 0x1b9   :  { %v230_v21 = vpop.f32.mrf.mxu0 }
 0x1ba   :  { %v231_v22 = vadd.f32 %v308_v13, %v230_v21 }
 0x1bc   :  { %v234_v11 = vmul.f32 %v231_v22, %v66_v20 }
 0x1be   :  { %v236_v15 = vadd.f32 %v234_v11, %v473_v1 }
 0x1c0   :  { %238 = vst [vmem:[#allocation8 + $0x8] sm:$0xff] %v236_v15 }
 0x1c1   :  { %251 = dma.vmem_to_hbm [thread:$0]  %s244_s8, 256, %s246_s11, [#allocation4], %s425_s27, %s425_s27, %s426_s28  }
 0x1c2   :  { %419 = dma.done.wait [#allocation4], 256  }
 0x1c3   :  { %420 = vsyncadd [#allocation4], 4294967040 }
 0x1c4   :  { %256 = vsyncpa [#allocation3], 1 }
 0x1c5   :  { %257 = vsyncpa [#allocation6], 1 }
 0x1c6   :  { %258 = vsyncpa [#allocation4], 1 }

</bundles_post_ra>
